<compile_context>
chip_gen: v6e
topology: v6e:2x2x1
jax: 0.10.0
libtpu: 0.0.40
codegen_flags: <defaults>
</compile_context>

<pallas_src>
import jax
import jax.numpy as jnp
from jax import lax
from jax.experimental import pallas as pl
from jax.experimental.pallas import tpu as pltpu

CHUNK = 128  # tokens processed per grid step


def _round_up(x, m):
    return (x + m - 1) // m * m


def text_sentiment_kernel(tok_ref, bag_ref, table_ref, invcnt_ref, w_ref, b_ref,
                          out_ref, acc_ref):
    # tok_ref:    (CHUNK, 1) int32   token ids for this chunk (pad tokens = 0)
    # bag_ref:    (1, CHUNK) int32   bag id per token (-1 for padding -> dropped)
    # table_ref:  (V, D) bf16        VMEM-resident embedding table (unpadded D)
    # invcnt_ref: (B_pad, 1) f32     1 / bag_size (0 for empty / padded bags)
    # w_ref:      (D, C_pad) bf16    fc weight (transposed); b_ref: (1, C_pad) f32
    # out_ref:    (B_pad, C_pad) f32 ; acc_ref: (B_pad, D) f32 scratch
    k = pl.program_id(0)
    n_chunks = pl.num_programs(0)
    B_pad, D = acc_ref.shape
    V = table_ref.shape[0]
    chunk = tok_ref.shape[0]

    @pl.when(k == 0)
    def _():
        acc_ref[...] = jnp.zeros_like(acc_ref)

    # Gather this chunk's embedding rows with a one-hot MXU matmul:
    # rows[i, :] = table[text[i], :]   (exact -- one-hot selects a single row).
    toks = tok_ref[...]                                            # (CHUNK, 1)
    v_iota = lax.broadcasted_iota(jnp.int32, (chunk, V), 1)
    gather = (v_iota == toks).astype(jnp.bfloat16)                 # (CHUNK, V)
    rows = jnp.dot(gather, table_ref[...],
                   preferred_element_type=jnp.float32)             # (CHUNK, D)

    # Segment-sum into bags with a one-hot bag-membership MXU matmul (padding
    # tokens have bag id -1 and never match, so they contribute nothing).
    bags = bag_ref[...]                                            # (1, CHUNK)
    b_iota = lax.broadcasted_iota(jnp.int32, (B_pad, chunk), 0)
    member = (b_iota == bags).astype(jnp.bfloat16)                 # (B_pad, CHUNK)
    acc_ref[...] += jnp.dot(member, rows.astype(jnp.bfloat16),
                            preferred_element_type=jnp.float32)    # (B_pad, D)

    @pl.when(k == n_chunks - 1)
    def _():
        embedded = acc_ref[...] * invcnt_ref[...]                  # per-bag mean
        out_ref[...] = (
            jnp.dot(embedded.astype(jnp.bfloat16), w_ref[...],
                    preferred_element_type=jnp.float32)            # bf16 MXU, f32 acc
            + b_ref[...])


def text_sentiment_forward(text, offsets, emb_w, fc_w, fc_b):
    """text: (T,) int token ids; offsets: (B,) int bag starts (sorted, [0]==0);
    emb_w: (V, D); fc_w: (C, D) (PyTorch layout); fc_b: (C,).  Returns (B, C) f32."""
    T = int(text.shape[0])
    B = int(offsets.shape[0])
    V, D = int(emb_w.shape[0]), int(emb_w.shape[1])
    C = int(fc_w.shape[0])
    B_pad = _round_up(max(B, 1), 8)
    C_pad = _round_up(C, 128)
    T_pad = max(_round_up(max(T, 1), CHUNK), CHUNK)   # >= 1 chunk even if T == 0
    n_chunks = T_pad // CHUNK

    text = jnp.clip(text.astype(jnp.int32), 0, V - 1)          # guard one-hot gather
    offsets = offsets.astype(jnp.int32)

    # Pure index/control prep: per-token bag id and per-bag 1/count.
    bag_ids = (jnp.searchsorted(offsets, jnp.arange(T, dtype=jnp.int32),
                                side="right") - 1).astype(jnp.int32)
    ends = jnp.concatenate([offsets[1:], jnp.array([T], jnp.int32)])
    counts = (ends - offsets).astype(jnp.float32)
    inv_counts = jnp.where(counts > 0, 1.0 / jnp.maximum(counts, 1.0), 0.0)
    inv_counts = jnp.pad(inv_counts, (0, B_pad - B)).reshape(B_pad, 1)

    # Token ids as a (T_pad, 1) column (sublane axis) so the (CHUNK, V) one-hot
    # needs no in-kernel lane->sublane relayout; bag ids as a (1, T_pad) row.
    tok2d = jnp.pad(text, (0, T_pad - T)).reshape(T_pad, 1)
    bag2d = jnp.pad(bag_ids, (0, T_pad - T), constant_values=-1).reshape(1, T_pad)

    table = emb_w.astype(jnp.bfloat16)                           # (V, D), no D padding
    w_pad = jnp.pad(fc_w.T.astype(jnp.bfloat16), ((0, 0), (0, C_pad - C)))
    b_pad = jnp.pad(fc_b.astype(jnp.float32), (0, C_pad - C)).reshape(1, C_pad)

    grid_spec = pltpu.PrefetchScalarGridSpec(
        num_scalar_prefetch=0,
        grid=(n_chunks,),
        in_specs=[
            pl.BlockSpec((CHUNK, 1), lambda k: (k, 0)),          # token ids (chunked)
            pl.BlockSpec((1, CHUNK), lambda k: (0, k)),          # bag ids (chunked)
            pl.BlockSpec((V, D), lambda k: (0, 0)),              # embedding table (resident)
            pl.BlockSpec((B_pad, 1), lambda k: (0, 0)),          # inv counts (resident)
            pl.BlockSpec((D, C_pad), lambda k: (0, 0)),          # fc weight (resident)
            pl.BlockSpec((1, C_pad), lambda k: (0, 0)),          # fc bias (resident)
        ],
        out_specs=pl.BlockSpec((B_pad, C_pad), lambda k: (0, 0)),
        scratch_shapes=[pltpu.VMEM((B_pad, D), jnp.float32)],
    )

    cost = pl.CostEstimate(
        flops=2 * T_pad * V * D + 2 * B_pad * T_pad * D + 2 * B_pad * D * C_pad,
        transcendentals=0,
        bytes_accessed=(V * D * 2 + T_pad * 8 + D * C_pad * 2
                        + B_pad * C_pad * 4 + B_pad * 4 + C_pad * 4),
    )

    out = pl.pallas_call(
        text_sentiment_kernel,
        out_shape=jax.ShapeDtypeStruct((B_pad, C_pad), jnp.float32),
        grid_spec=grid_spec,
        compiler_params=pltpu.CompilerParams(
            # Single chunk axis reduces into the shared (B_pad, C_pad) output.
            dimension_semantics=("arbitrary",),
            # Resident table + fc weights + chunk buffers + accumulator are tiny
            # at these sizes; 32 MiB is within the scoped default on v5e/v6e/v7x.
            vmem_limit_bytes=32 * 1024 * 1024,
        ),
        cost_estimate=cost,
    )(tok2d, bag2d, table, inv_counts, w_pad, b_pad)
    return out[:B, :C]


def reference_forward(text, offsets, emb_w, fc_w, fc_b):
    T = text.shape[0]
    B = offsets.shape[0]
    ends = jnp.concatenate([offsets[1:], jnp.array([T], jnp.int32)])
    embs = emb_w[text]                        # (T, D)
    rows = []
    for b in range(B):
        s, e = int(offsets[b]), int(ends[b])
        rows.append(embs[s:e].mean(axis=0))
    embedded = jnp.stack(rows)                # (B, D)
    return embedded @ fc_w.T + fc_b


if __name__ == "__main__":
    vocab_size, embed_dim, num_class = 64, 32, 4
    batch, total_tokens = 8, 32

    key = jax.random.PRNGKey(0)
    k_emb, k_fc, k_txt = jax.random.split(key, 3)

    # Deterministic init mirroring TextSentiment.init_weights (uniform ±0.5, zero bias).
    initrange = 0.5
    emb_w = jax.random.uniform(k_emb, (vocab_size, embed_dim),
                               minval=-initrange, maxval=initrange, dtype=jnp.float32)
    fc_w = jax.random.uniform(k_fc, (num_class, embed_dim),
                              minval=-initrange, maxval=initrange, dtype=jnp.float32)
    fc_b = jnp.zeros((num_class,), jnp.float32)

    # Synthetic batch: flat token stream + bag offsets (EmbeddingBag input format).
    text = jax.random.randint(k_txt, (total_tokens,), 0, vocab_size, dtype=jnp.int32)
    offsets = jnp.array([0, 3, 7, 12, 16, 21, 25, 29], dtype=jnp.int32)  # batch=8 bags

    out = text_sentiment_forward(text, offsets, emb_w, fc_w, fc_b)
    out = jax.block_until_ready(out)

    ref = reference_forward(text, offsets, emb_w, fc_w, fc_b)
    assert out.shape == (batch, num_class)
    # bf16 MXU operands (table + pooled mean + fc weight) with f32 accumulation -> relaxed tol.
    assert jnp.allclose(out, ref, atol=2e-2, rtol=2e-2), float(jnp.max(jnp.abs(out - ref)))

    print("KERNEL_OK")
</pallas_src>

<mosaic_0001>
module attributes {stable_mosaic.version = 11 : i64} {
  func.func @text_sentiment_kernel(%arg0: i32, %arg1: memref<128x1xi32, #tpu.memory_space<vmem>>, %arg2: memref<1x128xi32, #tpu.memory_space<vmem>>, %arg3: memref<64x32xbf16, #tpu.memory_space<vmem>>, %arg4: memref<8x1xf32, #tpu.memory_space<vmem>>, %arg5: memref<32x128xbf16, #tpu.memory_space<vmem>>, %arg6: memref<1x128xf32, #tpu.memory_space<vmem>>, %arg7: memref<8x128xf32, #tpu.memory_space<vmem>>, %arg8: memref<8x32xf32, #tpu.memory_space<vmem>>) attributes {dimension_semantics = [#tpu.dimension_semantics<arbitrary>], iteration_bounds = array<i64: 1>, scalar_prefetch = 0 : i64, scratch_operands = 1 : i64, tpu.core_type = #tpu.core_type<tc>, window_params = [{transform_indices = @transform_0, window_bounds = array<i64: 128, 1>}, {transform_indices = @transform_1, window_bounds = array<i64: 1, 128>}, {pipeline_mode = #tpu.pipeline_mode<synchronous>, transform_indices = @transform_2, window_bounds = array<i64: 64, 32>}, {pipeline_mode = #tpu.pipeline_mode<synchronous>, transform_indices = @transform_3, window_bounds = array<i64: 8, 1>}, {pipeline_mode = #tpu.pipeline_mode<synchronous>, transform_indices = @transform_4, window_bounds = array<i64: 32, 128>}, {pipeline_mode = #tpu.pipeline_mode<synchronous>, transform_indices = @transform_5, window_bounds = array<i64: 1, 128>}, {pipeline_mode = #tpu.pipeline_mode<synchronous>, transform_indices = @transform_6, window_bounds = array<i64: 8, 128>}]} {
    %c0_i32 = arith.constant 0 : i32
    %0 = arith.cmpi eq, %arg0, %c0_i32 : i32
    %1 = arith.extui %0 : i1 to i32
    %c0_i32_0 = arith.constant 0 : i32
    %2 = arith.cmpi ne, %1, %c0_i32_0 : i32
    scf.if %2 {
      %cst_13 = arith.constant 0.000000e+00 : f32
      %27 = vector.broadcast %cst_13 : f32 to vector<8x32xf32>
      %c0_14 = arith.constant 0 : index
      %c0_15 = arith.constant 0 : index
      %28 = vector.load %arg8[%c0_14, %c0_15] : memref<8x32xf32, #tpu.memory_space<vmem>>, vector<8x32xf32>
      tpu.vector_store %arg8[%c0_14, %c0_15], %27 {strides = array<i32>} : memref<8x32xf32, #tpu.memory_space<vmem>>, vector<8x32xf32>,
    } else {
    }
    %c0 = arith.constant 0 : index
    %c0_1 = arith.constant 0 : index
    %3 = vector.load %arg1[%c0, %c0_1] : memref<128x1xi32, #tpu.memory_space<vmem>>, vector<128x1xi32>
    %4 = tpu.iota {dimensions = array<i32: 1>} : vector<128x64xi32>
    %5 = vector.broadcast %3 : vector<128x1xi32> to vector<128x64xi32>
    %6 = arith.cmpi eq, %4, %5 : vector<128x64xi32>
    %7 = arith.extui %6 : vector<128x64xi1> to vector<128x64xi32>
    %8 = arith.sitofp %7 : vector<128x64xi32> to vector<128x64xf32>
    %9 = arith.truncf %8 : vector<128x64xf32> to vector<128x64xbf16>
    %c0_2 = arith.constant 0 : index
    %c0_3 = arith.constant 0 : index
    %10 = vector.load %arg3[%c0_2, %c0_3] : memref<64x32xbf16, #tpu.memory_space<vmem>>, vector<64x32xbf16>
    %cst = arith.constant dense<0.000000e+00> : vector<128x32xf32>
    %11 = tpu.matmul %9, %10, %cst {dimension_numbers = #tpu.dot_dimension_numbers<[1], [0], [0], [1], [0, 0, 1, 1], [], []>} : vector<128x64xbf16>, vector<64x32xbf16>, vector<128x32xf32> -> vector<128x32xf32>
    %c0_4 = arith.constant 0 : index
    %c0_5 = arith.constant 0 : index
    %12 = vector.load %arg2[%c0_4, %c0_5] : memref<1x128xi32, #tpu.memory_space<vmem>>, vector<1x128xi32>
    %13 = tpu.iota {dimensions = array<i32: 0>} : vector<8x128xi32>
    %14 = vector.broadcast %12 : vector<1x128xi32> to vector<8x128xi32>
    %15 = arith.cmpi eq, %13, %14 : vector<8x128xi32>
    %16 = arith.extui %15 : vector<8x128xi1> to vector<8x128xi32>
    %17 = arith.sitofp %16 : vector<8x128xi32> to vector<8x128xf32>
    %18 = arith.truncf %17 : vector<8x128xf32> to vector<8x128xbf16>
    %c0_6 = arith.constant 0 : index
    %c0_7 = arith.constant 0 : index
    %19 = vector.load %arg8[%c0_6, %c0_7] : memref<8x32xf32, #tpu.memory_space<vmem>>, vector<8x32xf32>
    %20 = arith.truncf %11 : vector<128x32xf32> to vector<128x32xbf16>
    %cst_8 = arith.constant dense<0.000000e+00> : vector<8x32xf32>
    %21 = tpu.matmul %18, %20, %cst_8 {dimension_numbers = #tpu.dot_dimension_numbers<[1], [0], [0], [1], [0, 0, 1, 1], [], []>} : vector<8x128xbf16>, vector<128x32xbf16>, vector<8x32xf32> -> vector<8x32xf32>
    %22 = arith.addf %19, %21 : vector<8x32xf32>
    %c0_9 = arith.constant 0 : index
    %c0_10 = arith.constant 0 : index
    %23 = vector.load %arg8[%c0_9, %c0_10] : memref<8x32xf32, #tpu.memory_space<vmem>>, vector<8x32xf32>
    tpu.vector_store %arg8[%c0_9, %c0_10], %22 {strides = array<i32>} : memref<8x32xf32, #tpu.memory_space<vmem>>, vector<8x32xf32>,
    %c0_i32_11 = arith.constant 0 : i32
    %24 = arith.cmpi eq, %arg0, %c0_i32_11 : i32
    %25 = arith.extui %24 : i1 to i32
    %c0_i32_12 = arith.constant 0 : i32
    %26 = arith.cmpi ne, %25, %c0_i32_12 : i32
    scf.if %26 {
      %c0_13 = arith.constant 0 : index
      %c0_14 = arith.constant 0 : index
      %27 = vector.load %arg8[%c0_13, %c0_14] : memref<8x32xf32, #tpu.memory_space<vmem>>, vector<8x32xf32>
      %c0_15 = arith.constant 0 : index
      %c0_16 = arith.constant 0 : index
      %28 = vector.load %arg4[%c0_15, %c0_16] : memref<8x1xf32, #tpu.memory_space<vmem>>, vector<8x1xf32>
      %29 = vector.broadcast %28 : vector<8x1xf32> to vector<8x32xf32>
      %30 = arith.mulf %27, %29 : vector<8x32xf32>
      %31 = arith.truncf %30 : vector<8x32xf32> to vector<8x32xbf16>
      %c0_17 = arith.constant 0 : index
      %c0_18 = arith.constant 0 : index
      %32 = vector.load %arg5[%c0_17, %c0_18] : memref<32x128xbf16, #tpu.memory_space<vmem>>, vector<32x128xbf16>
      %cst_19 = arith.constant dense<0.000000e+00> : vector<8x128xf32>
      %33 = tpu.matmul %31, %32, %cst_19 {dimension_numbers = #tpu.dot_dimension_numbers<[1], [0], [0], [1], [0, 0, 1, 1], [], []>} : vector<8x32xbf16>, vector<32x128xbf16>, vector<8x128xf32> -> vector<8x128xf32>
      %c0_20 = arith.constant 0 : index
      %c0_21 = arith.constant 0 : index
      %34 = vector.load %arg6[%c0_20, %c0_21] : memref<1x128xf32, #tpu.memory_space<vmem>>, vector<1x128xf32>
      %35 = vector.broadcast %34 : vector<1x128xf32> to vector<8x128xf32>
      %36 = arith.addf %33, %35 : vector<8x128xf32>
      %c0_22 = arith.constant 0 : index
      %c0_23 = arith.constant 0 : index
      %37 = vector.load %arg7[%c0_22, %c0_23] : memref<8x128xf32, #tpu.memory_space<vmem>>, vector<8x128xf32>
      tpu.vector_store %arg7[%c0_22, %c0_23], %36 {strides = array<i32>} : memref<8x128xf32, #tpu.memory_space<vmem>>, vector<8x128xf32>,
    } else {
    }
    return
  }
  func.func @transform_0(%arg0: i32) -> (i32, i32) {
    %c0_i32 = arith.constant 0 : i32
    %c0_i32_0 = arith.constant 0 : i32
    return %arg0, %c0_i32 : i32, i32
  }
  func.func @transform_1(%arg0: i32) -> (i32, i32) {
    %c0_i32 = arith.constant 0 : i32
    %c0_i32_0 = arith.constant 0 : i32
    return %c0_i32, %arg0 : i32, i32
  }
  func.func @transform_2(%arg0: i32) -> (i32, i32) {
    %c0_i32 = arith.constant 0 : i32
    %c0_i32_0 = arith.constant 0 : i32
    %c0_i32_1 = arith.constant 0 : i32
    return %c0_i32, %c0_i32_0 : i32, i32
  }
  func.func @transform_3(%arg0: i32) -> (i32, i32) {
    %c0_i32 = arith.constant 0 : i32
    %c0_i32_0 = arith.constant 0 : i32
    %c0_i32_1 = arith.constant 0 : i32
    return %c0_i32, %c0_i32_0 : i32, i32
  }
  func.func @transform_4(%arg0: i32) -> (i32, i32) {
    %c0_i32 = arith.constant 0 : i32
    %c0_i32_0 = arith.constant 0 : i32
    %c0_i32_1 = arith.constant 0 : i32
    return %c0_i32, %c0_i32_0 : i32, i32
  }
  func.func @transform_5(%arg0: i32) -> (i32, i32) {
    %c0_i32 = arith.constant 0 : i32
    %c0_i32_0 = arith.constant 0 : i32
    %c0_i32_1 = arith.constant 0 : i32
    return %c0_i32, %c0_i32_0 : i32, i32
  }
  func.func @transform_6(%arg0: i32) -> (i32, i32) {
    %c0_i32 = arith.constant 0 : i32
    %c0_i32_0 = arith.constant 0 : i32
    %c0_i32_1 = arith.constant 0 : i32
    return %c0_i32, %c0_i32_0 : i32, i32
  }
}

</mosaic_0001>

<bundles_post_ra>
// kernel: tpu_custom_call.1
= control target key start
LH: loop header
LB: loop body
LE: loop exit
PB: predicated region body
PF: predicated region fallthrough
CT: control target
= control target key end

     0   :  { %v610_v2 = vmov 0   ;;  %v611_v5 = vmov 0.0   ;;  %s790_s0 = inlined_call_operand.vmem [shape: s32[128,1], index: 0, kind: input, shape index: {}]   ;;  %s791_s1 = inlined_call_operand.vmem [shape: s32[1,128], index: 1, kind: input, shape index: {}]   ;;  %s792_s2 = inlined_call_operand.vmem [shape: bf16[64,32], index: 2, kind: input, shape index: {}]   ;;  %s793_s3 = inlined_call_operand.vmem [shape: f32[8,1], index: 3, kind: input, shape index: {}]   ;;  %s794_s4 = inlined_call_operand.vmem [shape: bf16[32,128], index: 4, kind: input, shape index: {}]   ;;  %s795_s5 = inlined_call_operand.vmem [shape: f32[1,128], index: 5, kind: input, shape index: {}]   ;;  %s796_s6 = inlined_call_operand.hbm [shape: f32[8,128], index: 6, kind: output, shape index: {}]  }
   0x1   :  { %v33_v0 = vld [vmem:[%s790_s0 + $0x10] sm:$0xff]  ;;  %v31_v1 = vld [vmem:[%s790_s0] sm:$0xff]  ;;  %581 = vset.pattern.permute.xlu1 %v610_v2  ;;  %580 = vset.pattern.permute.xlu0 %v610_v2  ;;  %v34_v3 = vld [vmem:[%s790_s0 + $0x18] sm:$0xff] }
   0x2   :  { %56 = vperm.xlu1 %581, %v33_v0   ;;  %50 = vperm.xlu0 %580, %v31_v1   ;;  %v32_v4 = vld [vmem:[%s790_s0 + $0x8] sm:$0xff]  ;;  %v35_v7 = vld [vmem:[%s790_s0 + $0x20] sm:$0xff]  ;;  %v582_v8 = vld [vmem:[%s792_s2 + $0x18] sm:$0xff]  }
   0x3   :  { %547 = vmatprep.subr.bf16.mxu1 %v611_v5  ;;  %v36_v6 = vld [vmem:[%s790_s0 + $0x28] sm:$0xff]  ;;  %v583_v9 = vld [vmem:[%s792_s2 + $0x10] sm:$0xff]   ;;  %523 = vmatprep.subr.bf16.mxu0 %v582_v8  ;;  %v38_v10 = vld [vmem:[%s790_s0 + $0x38] sm:$0xff] }
   0x4   :  { %524 = vmatpush3.bf16.msra.mxu0 %v582_v8  ;;  %v37_v11 = vld [vmem:[%s790_s0 + $0x30] sm:$0xff]  ;;  %v584_v12 = vld [vmem:[%s792_s2 + $0x8] sm:$0xff]  }
   0x5   :  { %525 = vmatprep.subr.bf16.mxu0 %v583_v9 }
   0x6   :  { %59 = vperm.xlu1 %581, %v34_v3   ;;  %53 = vperm.xlu0 %580, %v32_v4  }
   0xa   :  { %65 = vperm.xlu1 %581, %v36_v6   ;;  %62 = vperm.xlu0 %580, %v35_v7  }
   0xb   :  { %11 = vsyncpa [#allocation4], 0  ;;  %526 = vmatpush3.bf16.msra.mxu0 %v583_v9  ;;  %v40_v13 = vld [vmem:[%s790_s0 + $0x48] sm:$0xff]  ;;  %v39_v14 = vld [vmem:[%s790_s0 + $0x40] sm:$0xff]  ;;  %v47_v23 = vlaneseq  ;;  %vm185_vm4 = vcmask 523264  }
   0xc   :  { %527 = vmatprep.subr.bf16.mxu0 %v584_v12  ;;  %v585_v15 = vld [vmem:[%s792_s2] sm:$0xff]   ;;  %v42_v16 = vld [vmem:[%s790_s0 + $0x58] sm:$0xff]  ;;  %v41_v17 = vld [vmem:[%s790_s0 + $0x50] sm:$0xff] }
   0xd   :  { %v44_v18 = vld [vmem:[%s790_s0 + $0x68] sm:$0xff]  ;;  %v43_v19 = vld [vmem:[%s790_s0 + $0x60] sm:$0xff]  ;;  %v46_v20 = vld [vmem:[%s790_s0 + $0x78] sm:$0xff]  ;;  %v715_v24 = vand.u32 127, %v47_v23 }
   0xe   :  { %71 = vperm.xlu1 %581, %v38_v10   ;;  %68 = vperm.xlu0 %580, %v37_v11   ;;  %v45_v21 = vld [vmem:[%s790_s0 + $0x70] sm:$0xff]  ;;  %v374_v22 = vld [vmem:[%s793_s3] sm:$0xff] }
   0xf   :  { %528 = vmatpush3.bf16.msra.mxu0 %v584_v12 }
  0x10   :  { %529 = vmatprep.subr.bf16.mxu0 %v585_v15 }
  0x12   :  { %77 = vperm.xlu1 %581, %v40_v13   ;;  %74 = vperm.xlu0 %580, %v39_v14  }
  0x13   :  { %530 = vmatpush3.bf16.msra.mxu0 %v585_v15 }
  0x16   :  { %83 = vperm.xlu1 %581, %v42_v16   ;;  %80 = vperm.xlu0 %580, %v41_v17  }
  0x1a   :  { %89 = vperm.xlu1 %581, %v44_v18   ;;  %86 = vperm.xlu0 %580, %v43_v19  }
  0x1e   :  { %95 = vperm.xlu1 %581, %v46_v20   ;;  %92 = vperm.xlu0 %580, %v45_v21  }
  0x22   :  { %377 = vperm.xlu0 %580, %v374_v22  }
  0x7d   :  { %v57_v25 = vpop.permute.xlu1 %56  ;;  %v51_v26 = vpop.permute.xlu0 %50 }
  0x7e   :  { %vm99_vm0 = vcmp.eq.s32.totalorder %v715_v24, %v57_v25  ;;  %vm97_vm1 = vcmp.eq.s32.totalorder %v715_v24, %v51_v26  ;;  %v309_v25 = vshrl.u32 %v47_v23, 7  ;;  %v586_v23 = vld [vmem:[%s794_s4 + $0x8] sm:$0xff]  }
  0x7f   :  { %v465_v29 = vsel %vm99_vm0, 1.0, %v611_v5  ;;  %v463_v30 = vsel %vm97_vm1, 1.0, %v611_v5  ;;  %vm612_vm1 = vmmov 0  }
  0x80   :  { %563 = vmatprep.mubr.msk.bf16.mxu1 %vm612_vm1, %v611_v5 }
  0x81   :  { %v60_v27 = vpop.permute.xlu1 %59  ;;  %v54_v28 = vpop.permute.xlu0 %53 }
  0x82   :  { %vm100_vm2 = vcmp.eq.s32.totalorder %v715_v24, %v60_v27  ;;  %vm98_vm3 = vcmp.eq.s32.totalorder %v715_v24, %v54_v28  ;;  %v491_v27 = vld [vmem:[%s791_s1] ss:$0 sm:$0xff] }
  0x83   :  { %v466_v31 = vsel %vm100_vm2, 1.0, %v611_v5  ;;  %v464_v32 = vsel %vm98_vm3, 1.0, %v611_v5  ;;  %vm29_vm2 = vcmask 261120   ;;  %vm314_vm3 = vcmp.eq.s32.totalorder %v309_v25, %v491_v27 }
  0x84   :  { %v146_v33 = vpack.c.bf16 %v466_v31, %v465_v29  ;;  %v145_v34 = vpack.c.bf16 %v464_v32, %v463_v30  ;;  %30 = vst.msk [vmem:[#allocation2] sm:$0xff] %vm29_vm2, %v611_v5  ;;  %v613_v29 = vmov 1.0|1.0   ;;  %v587_v30 = vld [vmem:[%s794_s4] sm:$0xff]   ;;  %s614_s4 = smov [#allocation3]  }
  0x85   :  { %v66_v35 = vpop.permute.xlu1 %65  ;;  %v63_v36 = vpop.permute.xlu0 %62  ;;  %s455_s19 = sshll.u32 %s614_s4, 4  ;;  %s456_s19 = int_to_ptr.vmem [resolvable:$true] %s455_s19 }
  0x86   :  { %vm102_vm5 = vcmp.eq.s32.totalorder %v715_v24, %v66_v35  ;;  %vm101_vm6 = vcmp.eq.s32.totalorder %v715_v24, %v63_v36  ;;  %531 = vmatprep.mubr.msk.bf16.mxu0 %vm185_vm4, %v145_v34  ;;  %s588_s20 = scalar_lea.vmem %s456_s19, 128  ;;  %p593_p1 = scmp.lt.s32.totalorder %s456_s19, %s456_s19 }
  0x87   :  { %v468_v37 = vsel %vm102_vm5, 1.0, %v611_v5  ;;  %v467_v38 = vsel %vm101_vm6, 1.0, %v611_v5  ;;  %532 = vmatmul.mubr.msk.bf16.vlgmr.msra.gmra.mxu0 %vm185_vm4, %v146_v33  ;;  %p589_p0 = scmp.ne.s32.totalorder %s456_s19, %s588_s20  ;;  %p594_p2 = scmp.lt.s32.totalorder %s588_s20, %s588_s20 }
  0x88   :  { %v147_v39 = vpack.c.bf16 %v468_v37, %v467_v38 }
  0x89   :  { %v72_v40 = vpop.permute.xlu1 %71  ;;  %v69_v41 = vpop.permute.xlu0 %68  ;;  %p595_p3 = por %p594_p2, %p593_p1 }
  0x8a   :  { %vm104_vm7 = vcmp.eq.s32.totalorder %v715_v24, %v72_v40  ;;  %vm103_vm8 = vcmp.eq.s32.totalorder %v715_v24, %v69_v41  ;;  %535 = vmatprep.mubr.msk.bf16.mxu0 %vm185_vm4, %v147_v39  ;;  %v495_v41 = vld [vmem:[%s795_s5] ss:$0 sm:$0xff] }
  0x8b   :  { %v470_v42 = vsel %vm104_vm7, 1.0, %v611_v5  ;;  %v469_v43 = vsel %vm103_vm8, 1.0, %v611_v5  ;;  %v318_v31 = vld [vmem:[#allocation2] sm:$0xff]  ;;  %p596_p4 = pnand %p595_p3, %p589_p0 }
  0x8c   :  { %v148_v44 = vpack.c.bf16 %v470_v42, %v469_v43 }
  0x8d   :  { %v78_v45 = vpop.permute.xlu1 %77  ;;  %v75_v46 = vpop.permute.xlu0 %74 }
  0x8e   :  { %vm106_vm9 = vcmp.eq.s32.totalorder %v715_v24, %v78_v45  ;;  %vm105_vm10 = vcmp.eq.s32.totalorder %v715_v24, %v75_v46 }
  0x8f   :  { %v472_v47 = vsel %vm106_vm9, 1.0, %v611_v5  ;;  %v471_v48 = vsel %vm105_vm10, 1.0, %v611_v5  ;;  %536 = vmatmul.mubr.msk.bf16.gmra.mxu0 %vm185_vm4, %v148_v44 }
  0x90   :  { %v149_v49 = vpack.c.bf16 %v472_v47, %v471_v48 }
  0x91   :  { %v84_v50 = vpop.permute.xlu1 %83  ;;  %v81_v51 = vpop.permute.xlu0 %80 }
  0x92   :  { %vm108_vm11 = vcmp.eq.s32.totalorder %v715_v24, %v84_v50  ;;  %vm107_vm12 = vcmp.eq.s32.totalorder %v715_v24, %v81_v51  ;;  %539 = vmatprep.mubr.msk.bf16.mxu0 %vm185_vm4, %v149_v49 }
  0x93   :  { %v474_v52 = vsel %vm108_vm11, 1.0, %v611_v5  ;;  %v473_v53 = vsel %vm107_vm12, 1.0, %v611_v5 }
  0x94   :  { %v150_v54 = vpack.c.bf16 %v474_v52, %v473_v53 }
  0x95   :  { %v90_v55 = vpop.permute.xlu1 %89  ;;  %v87_v56 = vpop.permute.xlu0 %86 }
  0x96   :  { %vm110_vm13 = vcmp.eq.s32.totalorder %v715_v24, %v90_v55  ;;  %vm109_vm14 = vcmp.eq.s32.totalorder %v715_v24, %v87_v56 }
  0x97   :  { %v476_v57 = vsel %vm110_vm13, 1.0, %v611_v5  ;;  %v475_v58 = vsel %vm109_vm14, 1.0, %v611_v5  ;;  %540 = vmatmul.mubr.msk.bf16.gmra.mxu0 %vm185_vm4, %v150_v54 }
  0x98   :  { %v151_v59 = vpack.c.bf16 %v476_v57, %v475_v58 }
  0x99   :  { %v96_v60 = vpop.permute.xlu1 %95  ;;  %v93_v61 = vpop.permute.xlu0 %92 }
  0x9a   :  { %vm112_vm15 = vcmp.eq.s32.totalorder %v715_v24, %v96_v60  ;;  %vm111_vm0 = vcmp.eq.s32.totalorder %v715_v24, %v93_v61  ;;  %543 = vmatprep.mubr.msk.bf16.mxu0 %vm185_vm4, %v151_v59 }
  0x9b   :  { %v478_v62 = vsel %vm112_vm15, 1.0, %v611_v5  ;;  %v477_v63 = vsel %vm111_vm0, 1.0, %v611_v5 }
  0x9c   :  { %v152_v0 = vpack.c.bf16 %v478_v62, %v477_v63 }
  0x9d   :  { %v378_v37 = vpop.permute.xlu0 %377 }
  0x9f   :  { %544 = vmatmul.mubr.msk.bf16.gmra.mxu0 %vm185_vm4, %v152_v0  ;;  %vm493_vm4 = vmpackc.low %vm314_vm3, %vm314_vm3 }
 0x147   :  { %v533_v1 = vpop.f32.mrf.mxu0 }
 0x149   :  { %v244_v2 = vpop.f32.mrf.mxu0 }
 0x14b   :  { %v534_v3 = vpop.f32.mrf.mxu0 }
 0x14c   :  { %v320_v26 = vpack.c.bf16 %v534_v3, %v533_v1 }
 0x14d   :  { %v247_v4 = vpop.f32.mrf.mxu0 }
 0x14e   :  { %v319_v28 = vpack.c.bf16 %v247_v4, %v244_v2 }
 0x14f   :  { %v537_v6 = vpop.f32.mrf.mxu0 }
 0x151   :  { %v260_v7 = vpop.f32.mrf.mxu0 }
 0x153   :  { %v538_v8 = vpop.f32.mrf.mxu0 }
 0x154   :  { %v322_v22 = vpack.c.bf16 %v538_v8, %v537_v6 }
 0x155   :  { %v263_v9 = vpop.f32.mrf.mxu0 }
 0x156   :  { %v321_v24 = vpack.c.bf16 %v263_v9, %v260_v7 }
 0x157   :  { %v541_v10 = vpop.f32.mrf.mxu0 }
 0x159   :  { %v276_v11 = vpop.f32.mrf.mxu0 }
 0x15b   :  { %v542_v12 = vpop.f32.mrf.mxu0 }
 0x15c   :  { %v324_v20 = vpack.c.bf16 %v542_v12, %v541_v10 }
 0x15d   :  { %v279_v13 = vpop.f32.mrf.mxu0 }
 0x15e   :  { %v323_v21 = vpack.c.bf16 %v279_v13, %v276_v11 }
 0x15f   :  { %v545_v14 = vpop.f32.mrf.mxu0 }
 0x161   :  { %v292_v15 = vpop.f32.mrf.mxu0 }
 0x163   :  { %v546_v16 = vpop.f32.mrf.mxu0 }
 0x164   :  { %v326_v17 = vpack.c.bf16 %v546_v16, %v545_v14 }
 0x165   :  { %v295_v18 = vpop.f32.mrf.mxu0 }
 0x166   :  { %548 = vmatpush3.bf16.msra.mxu1 %v326_v17  ;;  %v325_v19 = vpack.c.bf16 %v295_v18, %v292_v15 }
 0x167   :  { %549 = vmatprep.subr.bf16.mxu1 %v611_v5 }
 0x16a   :  { %550 = vmatpush3.bf16.msra.mxu1 %v325_v19 }
 0x16b   :  { %551 = vmatprep.subr.bf16.mxu1 %v611_v5 }
 0x16e   :  { %552 = vmatpush3.bf16.msra.mxu1 %v324_v20 }
 0x16f   :  { %553 = vmatprep.subr.bf16.mxu1 %v611_v5 }
 0x172   :  { %554 = vmatpush3.bf16.msra.mxu1 %v323_v21 }
 0x173   :  { %555 = vmatprep.subr.bf16.mxu1 %v611_v5 }
 0x176   :  { %556 = vmatpush3.bf16.msra.mxu1 %v322_v22 }
 0x177   :  { %557 = vmatprep.subr.bf16.mxu1 %v611_v5 }
 0x17a   :  { %558 = vmatpush3.bf16.msra.mxu1 %v321_v24 }
 0x17b   :  { %559 = vmatprep.subr.bf16.mxu1 %v611_v5 }
 0x17e   :  { %560 = vmatpush3.bf16.msra.mxu1 %v320_v26 }
 0x17f   :  { %561 = vmatprep.subr.bf16.mxu1 %v611_v5 }
 0x182   :  { %562 = vmatpush3.bf16.msra.mxu1 %v319_v28 }
 0x183   :  { %567 = vmatprep.subr.bf16.mxu1 %v611_v5 }
 0x185   :  { %564 = vmatmul.mubr.msk.bf16.vlgmr.msra.gmra.mxu1 %vm493_vm4, %v613_v29 }
 0x186   :  { %571 = vmatprep.mubr.msk.bf16.mxu1 %vm612_vm1, %v611_v5  ;;  %568 = vmatpush3.bf16.msra.mxu1 %v586_v23 }
 0x187   :  { %569 = vmatprep.subr.bf16.mxu1 %v611_v5 }
 0x18a   :  { %570 = vmatpush3.bf16.msra.mxu1 %v587_v30 }
 0x245   :  { %v361_v32 = vpop.f32.mrf.mxu1 }
 0x246   :  { %v367_v33 = vadd.f32 %v361_v32, %v318_v31 }
 0x247   :  { %v565_v34 = vpop.f32.mrf.mxu1 }
 0x248   :  { %369 = vst.msk [vmem:[#allocation2] sm:$0xff] %vm29_vm2, %v367_v33 }
 0x249   :  { %v364_v35 = vpop.f32.mrf.mxu1 }
 0x24b   :  { %v566_v36 = vpop.f32.mrf.mxu1 }
 0x24f   :  { %v373_v38 = vld [vmem:[#allocation2] sm:$0xff] }
 0x250   :  { %v380_v39 = vmul.f32 %v378_v37, %v373_v38 }
 0x252   :  { %v381_v40 = vpack.c.bf16 %v380_v39, %v380_v39 }
 0x254   :  { %572 = vmatmul.mubr.msk.bf16.vlgmr.msra.gmra.mxu1 %vm29_vm2, %v381_v40 }
 0x314   :  { %v442_v5 = vpop.f32.mrf.mxu1 }
 0x315   :  { %v443_v42 = vadd.f32 %v495_v41, %v442_v5 }
 0x316   :  { %v573_v43 = vpop.f32.mrf.mxu1 }
 0x317   :  { %448 = vst [vmem:[#allocation3] sm:$0xff] %v443_v42 }
 0x318   :  { %v445_v44 = vpop.f32.mrf.mxu1 }
 0x319   :  { %599 = shalt.err (!%p596_p4)
}
 0x31a   :  { %458 = dma.vmem_to_hbm [thread:$0]  %s456_s19, 128, %s796_s6, [#allocation4]   ;;  %v574_v45 = vpop.f32.mrf.mxu1 }
 0x31b   :  { %608 = dma.done.wait [#allocation4], 128  }
 0x31c   :  { %609 = vsyncadd [#allocation4], 4294967168 }
 0x31d   :  { %462 = vsyncpa [#allocation4], 1 }

</bundles_post_ra>
